<compile_context>
chip_gen: v6e
topology: v6e:2x2x1
jax: 0.10.0
libtpu: 0.0.40
codegen_flags: <defaults>
</compile_context>

<pallas_src>
import functools

import jax
import jax.numpy as jnp
from jax.experimental import pallas as pl
from jax.experimental.pallas import tpu as pltpu

LANE = 128
SUBLANE = 8


def _round_up(n, m):
    return (n + m - 1) // m * m


def _cdiv(a, b):
    return (a + b - 1) // b


def mlp_kernel(x_ref, w1_ref, b1_ref, w2_ref, b2_ref, w3_ref, b3_ref, o_ref,
               *, out_dim):
    # In-kernel f32 -> bf16 cast (rides free VPU slots; kernel is DMA-bound).
    x = x_ref[...].astype(jnp.bfloat16)
    # Layer 1: x @ W1 + b1, ReLU   (bf16 MXU matmul, f32 accumulate/epilogue)
    h1 = jnp.dot(x, w1_ref[...], preferred_element_type=jnp.float32)
    h1 = jnp.maximum(h1 + b1_ref[...], 0.0)
    # Layer 2: h1 @ W2 + b2, ReLU
    h2 = jnp.dot(h1.astype(jnp.bfloat16), w2_ref[...],
                 preferred_element_type=jnp.float32)
    h2 = jnp.maximum(h2 + b2_ref[...], 0.0)
    # Layer 3: h2 @ W3 + b3 (no activation)
    out = jnp.dot(h2.astype(jnp.bfloat16), w3_ref[...],
                  preferred_element_type=jnp.float32)
    out = out + b3_ref[...]
    # Lane-padded logit columns [out_dim:] are all-zero-weight filler; drop
    # them before the store so only out_dim f32 lanes go back to HBM.
    o_ref[...] = out[:, :out_dim].astype(o_ref.dtype)


def prepare_params(w1, b1, w2, b2, w3, b3):
    """One-time (load-time) conversion from PyTorch layout (weights [out, in],
    biases [out]) to kernel layout: weights transposed to [in, out], feature
    dims zero-padded to multiples of 128 lanes, the layer-1 contraction dim
    padded to a multiple of 16 (bf16 sublane packing), weights cast to bf16,
    biases kept f32 as [1, out_pad].  Call once, not per forward pass."""
    d_in = w1.shape[1]
    d_in_pad = _round_up(d_in, 16)
    h1p = _round_up(w1.shape[0], LANE)
    h2p = _round_up(w2.shape[0], LANE)
    outp = _round_up(w3.shape[0], LANE)
    d_out = w3.shape[0]

    def prep(w, b, in_pad, out_pad):
        wt = jnp.asarray(w, jnp.float32).T                      # [in, out]
        i, o = wt.shape
        wt = jnp.pad(wt, ((0, in_pad - i), (0, out_pad - o)))
        bp = jnp.pad(jnp.asarray(b, jnp.float32), (0, out_pad - o)).reshape(1, -1)
        return wt.astype(jnp.bfloat16), bp

    w1p, b1p = prep(w1, b1, d_in_pad, h1p)   # [d_in_pad, h1p]
    w2p, b2p = prep(w2, b2, h1p, h2p)        # [h1p,      h2p]
    w3p, b3p = prep(w3, b3, h2p, outp)       # [h2p,      outp]
    return (w1p, b1p, w2p, b2p, w3p, b3p), d_out


def _choose_batch_tiling(B, d_in_pad, h1p, h2p, outp, out_dim, x_itemsize):
    """Even batch-tile split: waste <= 7 rows/tile, >=2 tiles for v7x once the
    batch is big enough, tile capped by a conservative (v7x-safe) VMEM budget."""
    b8 = _round_up(B, SUBLANE)

    weight_bytes = 2 * (d_in_pad * h1p + h1p * h2p + h2p * outp)   # bf16, 1-buf
    bias_bytes = 4 * (h1p + h2p + outp)
    per_row = (2 * d_in_pad * x_itemsize          # x tile, double-buffered
               + 2 * out_dim * 4                  # logits tile, double-buffered
               + (h1p + h2p + outp) * 4)          # f32 intermediates of live tile
    budget = 24 * 1024 * 1024 - weight_bytes - bias_bytes
    tb_vmem = max(SUBLANE, (budget // max(per_row, 1)) // SUBLANE * SUBLANE)

    tb_cap = min(1024, tb_vmem)                   # big tiles amortize step overhead
    num_tiles = _cdiv(b8, tb_cap)
    # v7x has 2 TensorCores: give the "parallel" axis >=2 tiles whenever each
    # tile still has >=128 rows (harmless on single-core v5e/v6e).
    if num_tiles == 1 and b8 >= 2 * LANE:
        num_tiles = 2
    tb = _round_up(_cdiv(b8, num_tiles), SUBLANE)
    return tb, num_tiles, num_tiles * tb


@functools.partial(jax.jit, static_argnames=("out_dim",))
def simple_text_classifier(x, params, *, out_dim):
    """Forward pass.  x: [B, input_dim] (any float dtype), params from
    prepare_params().  Returns [B, out_dim] f32 logits."""
    w1p, b1p, w2p, b2p, w3p, b3p = params
    B, d_in = x.shape
    d_in_pad, h1p = w1p.shape
    h2p = w2p.shape[1]
    outp = w3p.shape[1]

    TB, num_tiles, b_pad = _choose_batch_tiling(
        B, d_in_pad, h1p, h2p, outp, out_dim, x.dtype.itemsize)

    # Only the pads that are actually needed (no dtype cast; no-op when
    # already aligned -- XLA elides a zero-width pad).
    xb = x
    if b_pad != B or d_in_pad != d_in:
        xb = jnp.pad(x, ((0, b_pad - B), (0, d_in_pad - d_in)))

    def resident(a):
        # Whole array, same block every grid step -> stays VMEM-resident;
        # single-buffered since the block index never changes.
        return pl.BlockSpec(a.shape, lambda i: (0,) * a.ndim,
                            pipeline_mode=pl.Buffered(1))

    weight_bytes = (w1p.size + w2p.size + w3p.size) * 2 \
        + (b1p.size + b2p.size + b3p.size) * 4
    cost = pl.CostEstimate(
        flops=2 * b_pad * (d_in_pad * h1p + h1p * h2p + h2p * outp),
        transcendentals=0,
        bytes_accessed=xb.size * xb.dtype.itemsize + weight_bytes
        + b_pad * out_dim * 4,
    )

    out = pl.pallas_call(
        functools.partial(mlp_kernel, out_dim=out_dim),
        out_shape=jax.ShapeDtypeStruct((b_pad, out_dim), jnp.float32),
        grid=(num_tiles,),
        in_specs=[
            pl.BlockSpec((TB, d_in_pad), lambda i: (i, 0)),  # x: per-tile pipeline
            resident(w1p), resident(b1p),
            resident(w2p), resident(b2p),
            resident(w3p), resident(b3p),
        ],
        # Narrow (out_dim-wide) output: last block dim == full array dim.
        out_specs=pl.BlockSpec((TB, out_dim), lambda i: (i, 0)),
        compiler_params=pltpu.CompilerParams(
            dimension_semantics=("parallel",),   # v7x: 2 TCs split batch tiles
        ),
        cost_estimate=cost,
    )(xb, w1p, b1p, w2p, b2p, w3p, b3p)

    return out[:B] if b_pad != B else out


def init_params(key, input_dim, hidden_dim1, hidden_dim2, output_dim):
    """Deterministic init mimicking nn.Linear (uniform +/- 1/sqrt(fan_in)),
    in PyTorch layout (weights [out, in])."""
    ks = jax.random.split(key, 6)

    def linear(kw, kb, fan_in, fan_out):
        bound = 1.0 / jnp.sqrt(fan_in)
        w = jax.random.uniform(kw, (fan_out, fan_in), jnp.float32, -bound, bound)
        b = jax.random.uniform(kb, (fan_out,), jnp.float32, -bound, bound)
        return w, b

    w1, b1 = linear(ks[0], ks[1], input_dim, hidden_dim1)
    w2, b2 = linear(ks[2], ks[3], hidden_dim1, hidden_dim2)
    w3, b3 = linear(ks[4], ks[5], hidden_dim2, output_dim)
    return w1, b1, w2, b2, w3, b3


def reference(x, w1, b1, w2, b2, w3, b3):
    h = jnp.maximum(x @ w1.T + b1, 0.0)
    h = jnp.maximum(h @ w2.T + b2, 0.0)
    return h @ w3.T + b3


if __name__ == "__main__":
    # Small shapes consistent with the module:
    # batch=2, input_dim=32, hidden_dim1=64, hidden_dim2=32, output_dim=8.
    B, D_IN, H1, H2, D_OUT = 2, 32, 64, 32, 8

    key = jax.random.PRNGKey(0)
    kx, kp = jax.random.split(key)
    x = jax.random.normal(kx, (B, D_IN), jnp.float32)

    raw_params = init_params(kp, D_IN, H1, H2, D_OUT)
    params, out_dim = prepare_params(*raw_params)   # one-time load-time prep

    out = simple_text_classifier(x, params, out_dim=out_dim)
    out = jax.block_until_ready(out)

    ref = reference(x, *raw_params)
    assert out.shape == (B, D_OUT)
    # bf16 matmul operands with f32 accumulation -> compare at bf16 tolerance.
    assert jnp.allclose(out, ref, atol=5e-2, rtol=5e-2), float(
        jnp.max(jnp.abs(out - ref)))

    print("KERNEL_OK")
</pallas_src>

<mosaic_0001>
module attributes {stable_mosaic.version = 11 : i64} {
  func.func @mlp_kernel(%arg0: i32, %arg1: memref<8x32xf32, #tpu.memory_space<vmem>>, %arg2: memref<32x128xbf16, #tpu.memory_space<vmem>>, %arg3: memref<1x128xf32, #tpu.memory_space<vmem>>, %arg4: memref<128x128xbf16, #tpu.memory_space<vmem>>, %arg5: memref<1x128xf32, #tpu.memory_space<vmem>>, %arg6: memref<128x128xbf16, #tpu.memory_space<vmem>>, %arg7: memref<1x128xf32, #tpu.memory_space<vmem>>, %arg8: memref<8x8xf32, #tpu.memory_space<vmem>>) attributes {dimension_semantics = [#tpu.dimension_semantics<parallel>], iteration_bounds = array<i64: 1>, scalar_prefetch = 0 : i64, scratch_operands = 0 : i64, tpu.core_type = #tpu.core_type<tc>, window_params = [{transform_indices = @transform_0, window_bounds = array<i64: 8, 32>}, {pipeline_mode = #tpu.pipeline_mode<synchronous>, transform_indices = @transform_1, window_bounds = array<i64: 32, 128>}, {pipeline_mode = #tpu.pipeline_mode<synchronous>, transform_indices = @transform_2, window_bounds = array<i64: 1, 128>}, {pipeline_mode = #tpu.pipeline_mode<synchronous>, transform_indices = @transform_3, window_bounds = array<i64: 128, 128>}, {pipeline_mode = #tpu.pipeline_mode<synchronous>, transform_indices = @transform_4, window_bounds = array<i64: 1, 128>}, {pipeline_mode = #tpu.pipeline_mode<synchronous>, transform_indices = @transform_5, window_bounds = array<i64: 128, 128>}, {pipeline_mode = #tpu.pipeline_mode<synchronous>, transform_indices = @transform_6, window_bounds = array<i64: 1, 128>}, {transform_indices = @transform_7, window_bounds = array<i64: 8, 8>}]} {
    %c0 = arith.constant 0 : index
    %c0_0 = arith.constant 0 : index
    %0 = vector.load %arg1[%c0, %c0_0] : memref<8x32xf32, #tpu.memory_space<vmem>>, vector<8x32xf32>
    %1 = arith.truncf %0 : vector<8x32xf32> to vector<8x32xbf16>
    %c0_1 = arith.constant 0 : index
    %c0_2 = arith.constant 0 : index
    %2 = vector.load %arg2[%c0_1, %c0_2] : memref<32x128xbf16, #tpu.memory_space<vmem>>, vector<32x128xbf16>
    %cst = arith.constant dense<0.000000e+00> : vector<8x128xf32>
    %3 = tpu.matmul %1, %2, %cst {dimension_numbers = #tpu.dot_dimension_numbers<[1], [0], [0], [1], [0, 0, 1, 1], [], []>} : vector<8x32xbf16>, vector<32x128xbf16>, vector<8x128xf32> -> vector<8x128xf32>
    %c0_3 = arith.constant 0 : index
    %c0_4 = arith.constant 0 : index
    %4 = vector.load %arg3[%c0_3, %c0_4] : memref<1x128xf32, #tpu.memory_space<vmem>>, vector<1x128xf32>
    %5 = vector.broadcast %4 : vector<1x128xf32> to vector<8x128xf32>
    %6 = arith.addf %3, %5 : vector<8x128xf32>
    %cst_5 = arith.constant 0.000000e+00 : f32
    %7 = vector.broadcast %cst_5 : f32 to vector<8x128xf32>
    %8 = arith.maximumf %6, %7 : vector<8x128xf32>
    %9 = arith.truncf %8 : vector<8x128xf32> to vector<8x128xbf16>
    %c0_6 = arith.constant 0 : index
    %c0_7 = arith.constant 0 : index
    %10 = vector.load %arg4[%c0_6, %c0_7] : memref<128x128xbf16, #tpu.memory_space<vmem>>, vector<128x128xbf16>
    %cst_8 = arith.constant dense<0.000000e+00> : vector<8x128xf32>
    %11 = tpu.matmul %9, %10, %cst_8 {dimension_numbers = #tpu.dot_dimension_numbers<[1], [0], [0], [1], [0, 0, 1, 1], [], []>} : vector<8x128xbf16>, vector<128x128xbf16>, vector<8x128xf32> -> vector<8x128xf32>
    %c0_9 = arith.constant 0 : index
    %c0_10 = arith.constant 0 : index
    %12 = vector.load %arg5[%c0_9, %c0_10] : memref<1x128xf32, #tpu.memory_space<vmem>>, vector<1x128xf32>
    %13 = vector.broadcast %12 : vector<1x128xf32> to vector<8x128xf32>
    %14 = arith.addf %11, %13 : vector<8x128xf32>
    %cst_11 = arith.constant 0.000000e+00 : f32
    %15 = vector.broadcast %cst_11 : f32 to vector<8x128xf32>
    %16 = arith.maximumf %14, %15 : vector<8x128xf32>
    %17 = arith.truncf %16 : vector<8x128xf32> to vector<8x128xbf16>
    %c0_12 = arith.constant 0 : index
    %c0_13 = arith.constant 0 : index
    %18 = vector.load %arg6[%c0_12, %c0_13] : memref<128x128xbf16, #tpu.memory_space<vmem>>, vector<128x128xbf16>
    %cst_14 = arith.constant dense<0.000000e+00> : vector<8x128xf32>
    %19 = tpu.matmul %17, %18, %cst_14 {dimension_numbers = #tpu.dot_dimension_numbers<[1], [0], [0], [1], [0, 0, 1, 1], [], []>} : vector<8x128xbf16>, vector<128x128xbf16>, vector<8x128xf32> -> vector<8x128xf32>
    %c0_15 = arith.constant 0 : index
    %c0_16 = arith.constant 0 : index
    %20 = vector.load %arg7[%c0_15, %c0_16] : memref<1x128xf32, #tpu.memory_space<vmem>>, vector<1x128xf32>
    %21 = vector.broadcast %20 : vector<1x128xf32> to vector<8x128xf32>
    %22 = arith.addf %19, %21 : vector<8x128xf32>
    %23 = vector.extract_strided_slice %22 {offsets = [0, 0], sizes = [8, 8], strides = [1, 1]} : vector<8x128xf32> to vector<8x8xf32>
    %c0_17 = arith.constant 0 : index
    %c0_18 = arith.constant 0 : index
    %24 = vector.load %arg8[%c0_17, %c0_18] : memref<8x8xf32, #tpu.memory_space<vmem>>, vector<8x8xf32>
    tpu.vector_store %arg8[%c0_17, %c0_18], %23 {strides = array<i32>} : memref<8x8xf32, #tpu.memory_space<vmem>>, vector<8x8xf32>,
    return
  }
  func.func @transform_0(%arg0: i32) -> (i32, i32) {
    %c0_i32 = arith.constant 0 : i32
    %c0_i32_0 = arith.constant 0 : i32
    return %arg0, %c0_i32 : i32, i32
  }
  func.func @transform_1(%arg0: i32) -> (i32, i32) {
    %c0_i32 = arith.constant 0 : i32
    %c0_i32_0 = arith.constant 0 : i32
    %c0_i32_1 = arith.constant 0 : i32
    return %c0_i32, %c0_i32_0 : i32, i32
  }
  func.func @transform_2(%arg0: i32) -> (i32, i32) {
    %c0_i32 = arith.constant 0 : i32
    %c0_i32_0 = arith.constant 0 : i32
    %c0_i32_1 = arith.constant 0 : i32
    return %c0_i32, %c0_i32_0 : i32, i32
  }
  func.func @transform_3(%arg0: i32) -> (i32, i32) {
    %c0_i32 = arith.constant 0 : i32
    %c0_i32_0 = arith.constant 0 : i32
    %c0_i32_1 = arith.constant 0 : i32
    return %c0_i32, %c0_i32_0 : i32, i32
  }
  func.func @transform_4(%arg0: i32) -> (i32, i32) {
    %c0_i32 = arith.constant 0 : i32
    %c0_i32_0 = arith.constant 0 : i32
    %c0_i32_1 = arith.constant 0 : i32
    return %c0_i32, %c0_i32_0 : i32, i32
  }
  func.func @transform_5(%arg0: i32) -> (i32, i32) {
    %c0_i32 = arith.constant 0 : i32
    %c0_i32_0 = arith.constant 0 : i32
    %c0_i32_1 = arith.constant 0 : i32
    return %c0_i32, %c0_i32_0 : i32, i32
  }
  func.func @transform_6(%arg0: i32) -> (i32, i32) {
    %c0_i32 = arith.constant 0 : i32
    %c0_i32_0 = arith.constant 0 : i32
    %c0_i32_1 = arith.constant 0 : i32
    return %c0_i32, %c0_i32_0 : i32, i32
  }
  func.func @transform_7(%arg0: i32) -> (i32, i32) {
    %c0_i32 = arith.constant 0 : i32
    %c0_i32_0 = arith.constant 0 : i32
    return %arg0, %c0_i32 : i32, i32
  }
}

</mosaic_0001>

<bundles_post_ra>
// kernel: simple_text_classifier.1
= control target key start
LH: loop header
LB: loop body
LE: loop exit
PB: predicated region body
PF: predicated region fallthrough
CT: control target
= control target key end

     0   :  { %12 = vsyncpa [#allocation3], 0  ;;  %s646_s0 = inlined_call_operand.vmem [shape: f32[8,32], index: 0, kind: input, shape index: {}]   ;;  %s647_s1 = inlined_call_operand.hbm [shape: bf16[32,128], index: 1, kind: input, shape index: {}]   ;;  %s648_s2 = inlined_call_operand.vmem [shape: f32[1,128], index: 2, kind: input, shape index: {}]   ;;  %s649_s3 = inlined_call_operand.hbm [shape: bf16[128,128], index: 3, kind: input, shape index: {}]   ;;  %s650_s4 = inlined_call_operand.vmem [shape: f32[1,128], index: 4, kind: input, shape index: {}]   ;;  %s651_s5 = inlined_call_operand.hbm [shape: bf16[128,128], index: 5, kind: input, shape index: {}]   ;;  %s652_s6 = inlined_call_operand.vmem [shape: f32[1,128], index: 6, kind: input, shape index: {}]   ;;  %s653_s7 = inlined_call_operand.vmem [shape: f32[8,8], index: 7, kind: output, shape index: {}]  }
   0x1   :  { %13 = vsyncpa [#allocation5], 0  ;;  %s551_s24 = smov [#allocation4]   ;;  %s552_s26 = smov [#allocation2]  }
   0x2   :  { %s35_s25 = sshll.u32 %s551_s24, 4  ;;  %s21_s27 = sshll.u32 %s552_s26, 4  ;;  %s36_s25 = int_to_ptr.vmem [resolvable:$true] %s35_s25  ;;  %s22_s27 = int_to_ptr.vmem [resolvable:$true] %s21_s27 }
   0x3   :  { %s495_s28 = scalar_lea.vmem %s36_s25, 1024  ;;  %p500_p1 = scmp.lt.s32.totalorder %s36_s25, %s36_s25 }
   0x4   :  { %p496_p0 = scmp.ne.s32.totalorder %s36_s25, %s495_s28  ;;  %p501_p2 = scmp.lt.s32.totalorder %s495_s28, %s495_s28 }
   0x6   :  { %p502_p3 = por %p501_p2, %p500_p1 }
   0x8   :  { %p503_p4 = pnand %p502_p3, %p496_p0 }
   0xa   :  { %506 = shalt.err (!%p503_p4)
}
   0xb   :  { %s553_s29 = smov 64   ;;  %s554_s30 = smov 4  }
   0xc   :  { %41 = dma.hbm_to_vmem [thread:$0]  %s649_s3, 1024, %s36_s25, [#allocation5], %s553_s29, %s553_s29, %s554_s30  }
   0xd   :  { %s515_s10 = scalar_lea.vmem %s22_s27, 256  ;;  %p520_p6 = scmp.lt.s32.totalorder %s22_s27, %s22_s27 }
   0xe   :  { %p516_p5 = scmp.ne.s32.totalorder %s22_s27, %s515_s10  ;;  %p521_p7 = scmp.lt.s32.totalorder %s515_s10, %s515_s10 }
  0x10   :  { %p522_p8 = por %p521_p7, %p520_p6 }
  0x12   :  { %p523_p9 = pnand %p522_p8, %p516_p5 }
  0x14   :  { %526 = shalt.err (!%p523_p9)
}
  0x15   :  { %27 = dma.hbm_to_vmem [thread:$0]  %s647_s1, 256, %s22_s27, [#allocation3], %s553_s29, %s553_s29, %s554_s30  }
  0x16   :  { %s555_s13 = smov [#allocation6]  }
  0x17   :  { %s49_s14 = sshll.u32 %s555_s13, 4  ;;  %s50_s14 = int_to_ptr.vmem [resolvable:$true] %s49_s14 }
  0x18   :  { %s535_s15 = scalar_lea.vmem %s50_s14, 1024  ;;  %p540_p11 = scmp.lt.s32.totalorder %s50_s14, %s50_s14 }
  0x19   :  { %p536_p10 = scmp.ne.s32.totalorder %s50_s14, %s535_s15  ;;  %p541_p12 = scmp.lt.s32.totalorder %s535_s15, %s535_s15 }
  0x1b   :  { %p542_p13 = por %p541_p12, %p540_p11 }
  0x1d   :  { %p543_p0 = pnand %p542_p13, %p536_p10 }
  0x1f   :  { %546 = shalt.err (!%p543_p0)
}
  0x20   :  { %55 = dma.hbm_to_vmem [thread:$0]  %s651_s5, 1024, %s50_s14, [#allocation5], %s553_s29, %s553_s29, %s554_s30  }
  0x21   :  { %547 = dma.done.wait [#allocation3], 256  }
  0x22   :  { %548 = vsyncadd [#allocation3], 4294967040 }
  0x23   :  { %549 = dma.done.wait [#allocation5], 2048  }
  0x24   :  { %550 = vsyncadd [#allocation5], 4294965248  ;;  %v556_v0 = vmov 0.0   ;;  %vm557_vm0 = vmmov 0   ;;  %v469_v1 = vld [vmem:[#allocation2 + $0x8] sm:$0xff]   ;;  %v470_v2 = vld [vmem:[#allocation2] sm:$0xff]  }
  0x25   :  { %414 = vmatprep.subr.bf16.mxu0 %v556_v0  ;;  %418 = vmatprep.mubr.msk.bf16.mxu0 %vm557_vm0, %v556_v0  ;;  %v68_v3 = vld [vmem:[%s646_s0] sm:$0xff]  ;;  %v471_v4 = vld [vmem:[#allocation4 + $0x38] sm:$0xff]   ;;  %vm93_vm1 = vcmask 261120   ;;  %v473_v7 = vld [vmem:[#allocation4 + $0x28] sm:$0xff]   ;;  %vm363_vm2 = vcmask 64512  }
  0x26   :  { %422 = vmatprep.subr.bf16.mxu1 %v556_v0  ;;  %438 = vmatprep.mubr.msk.bf16.mxu1 %vm557_vm0, %v556_v0  ;;  %v69_v5 = vpack.c.bf16 %v68_v3, %v68_v3  ;;  %v472_v6 = vld [vmem:[#allocation4 + $0x30] sm:$0xff]   ;;  %v474_v8 = vld [vmem:[#allocation4 + $0x20] sm:$0xff]   ;;  %v475_v9 = vld [vmem:[#allocation4 + $0x18] sm:$0xff]  }
  0x27   :  { %415 = vmatpush3.bf16.msra.mxu0 %v469_v1  ;;  %423 = vmatpush3.bf16.msra.mxu1 %v471_v4  ;;  %v476_v10 = vld [vmem:[#allocation4 + $0x10] sm:$0xff]   ;;  %v477_v11 = vld [vmem:[#allocation4 + $0x8] sm:$0xff]   ;;  %v478_v12 = vld [vmem:[#allocation4] sm:$0xff]  }
  0x28   :  { %416 = vmatprep.subr.bf16.mxu0 %v556_v0  ;;  %424 = vmatprep.subr.bf16.mxu1 %v556_v0  ;;  %v479_v13 = vld [vmem:[#allocation6 + $0x38] sm:$0xff]   ;;  %v480_v14 = vld [vmem:[#allocation6 + $0x30] sm:$0xff]   ;;  %v481_v15 = vld [vmem:[#allocation6 + $0x28] sm:$0xff]  }
  0x29   :  { %v482_v16 = vld [vmem:[#allocation6 + $0x20] sm:$0xff]   ;;  %v483_v17 = vld [vmem:[#allocation6 + $0x18] sm:$0xff]   ;;  %v484_v18 = vld [vmem:[#allocation6 + $0x10] sm:$0xff]  }
  0x2a   :  { %v371_v19 = vld [vmem:[%s648_s2] ss:$0 sm:$0xff]  ;;  %v485_v27 = vld [vmem:[#allocation6 + $0x8] sm:$0xff]   ;;  %v486_v28 = vld [vmem:[#allocation6] sm:$0xff]  }
  0x2b   :  { %417 = vmatpush3.bf16.msra.mxu0 %v470_v2  ;;  %425 = vmatpush3.bf16.msra.mxu1 %v472_v6  ;;  %v375_v29 = vld [vmem:[%s650_s4] ss:$0 sm:$0xff] }
  0x2c   :  { %442 = vmatprep.subr.bf16.mxu0 %v556_v0  ;;  %426 = vmatprep.subr.bf16.mxu1 %v556_v0  ;;  %v384_v37 = vld [vmem:[%s652_s6] ss:$0 sm:$0xff] }
  0x2e   :  { %419 = vmatmul.mubr.msk.bf16.vlgmr.msra.gmra.mxu0 %vm93_vm1, %v69_v5 }
  0x2f   :  { %458 = vmatprep.mubr.msk.bf16.mxu0 %vm557_vm0, %v556_v0  ;;  %427 = vmatpush3.bf16.msra.mxu1 %v473_v7 }
  0x30   :  { %428 = vmatprep.subr.bf16.mxu1 %v556_v0  ;;  %443 = vmatpush3.bf16.msra.mxu0 %v479_v13 }
  0x31   :  { %444 = vmatprep.subr.bf16.mxu0 %v556_v0 }
  0x33   :  { %429 = vmatpush3.bf16.msra.mxu1 %v474_v8 }
  0x34   :  { %430 = vmatprep.subr.bf16.mxu1 %v556_v0  ;;  %445 = vmatpush3.bf16.msra.mxu0 %v480_v14 }
  0x35   :  { %446 = vmatprep.subr.bf16.mxu0 %v556_v0 }
  0x37   :  { %431 = vmatpush3.bf16.msra.mxu1 %v475_v9 }
  0x38   :  { %432 = vmatprep.subr.bf16.mxu1 %v556_v0  ;;  %447 = vmatpush3.bf16.msra.mxu0 %v481_v15 }
  0x39   :  { %448 = vmatprep.subr.bf16.mxu0 %v556_v0 }
  0x3b   :  { %433 = vmatpush3.bf16.msra.mxu1 %v476_v10 }
  0x3c   :  { %434 = vmatprep.subr.bf16.mxu1 %v556_v0  ;;  %449 = vmatpush3.bf16.msra.mxu0 %v482_v16 }
  0x3d   :  { %450 = vmatprep.subr.bf16.mxu0 %v556_v0 }
  0x3f   :  { %435 = vmatpush3.bf16.msra.mxu1 %v477_v11 }
  0x40   :  { %436 = vmatprep.subr.bf16.mxu1 %v556_v0  ;;  %451 = vmatpush3.bf16.msra.mxu0 %v483_v17 }
  0x41   :  { %452 = vmatprep.subr.bf16.mxu0 %v556_v0 }
  0x43   :  { %437 = vmatpush3.bf16.msra.mxu1 %v478_v12 }
  0x44   :  { %453 = vmatpush3.bf16.msra.mxu0 %v484_v18 }
  0x45   :  { %454 = vmatprep.subr.bf16.mxu0 %v556_v0 }
  0x48   :  { %455 = vmatpush3.bf16.msra.mxu0 %v485_v27 }
  0x49   :  { %456 = vmatprep.subr.bf16.mxu0 %v556_v0 }
  0x4c   :  { %457 = vmatpush3.bf16.msra.mxu0 %v486_v28 }
  0xee   :  { %v131_v20 = vpop.f32.mrf.mxu0 }
  0xef   :  { %v132_v21 = vadd.f32 %v371_v19, %v131_v20 }
  0xf0   :  { %v420_v22 = vpop.f32.mrf.mxu0 }
  0xf1   :  { %v137_v23 = vmax.f32 %v132_v21, 0.0 }
  0xf2   :  { %v134_v24 = vpop.f32.mrf.mxu0 }
  0xf3   :  { %v138_v25 = vpack.c.bf16 %v137_v23, %v137_v23 }
  0xf4   :  { %v421_v26 = vpop.f32.mrf.mxu0 }
  0xf5   :  { %439 = vmatmul.mubr.bf16.vlgmr.msra.gmra.mxu1 %v138_v25 }
 0x1b5   :  { %v244_v30 = vpop.f32.mrf.mxu1 }
 0x1b6   :  { %v245_v31 = vadd.f32 %v375_v29, %v244_v30 }
 0x1b7   :  { %v440_v32 = vpop.f32.mrf.mxu1 }
 0x1b8   :  { %v250_v33 = vmax.f32 %v245_v31, 0.0 }
 0x1b9   :  { %v247_v34 = vpop.f32.mrf.mxu1 }
 0x1ba   :  { %v251_v35 = vpack.c.bf16 %v250_v33, %v250_v33 }
 0x1bb   :  { %v441_v36 = vpop.f32.mrf.mxu1 }
 0x1bc   :  { %459 = vmatmul.mubr.bf16.vlgmr.msra.gmra.mxu0 %v251_v35 }
 0x27c   :  { %v357_v38 = vpop.f32.mrf.mxu0 }
 0x27d   :  { %v358_v39 = vadd.f32 %v384_v37, %v357_v38 }
 0x27e   :  { %v460_v40 = vpop.f32.mrf.mxu0 }
 0x27f   :  { %364 = vst.msk [vmem:[%s653_s7] sm:$0xff] %vm363_vm2, %v358_v39 }
 0x280   :  { %v360_v41 = vpop.f32.mrf.mxu0 }
 0x282   :  { %v461_v42 = vpop.f32.mrf.mxu0 }
 0x283   :  { %369 = vsyncpa [#allocation3], 1 }
 0x284   :  { %370 = vsyncpa [#allocation5], 1 }

</bundles_post_ra>
